<compile_context>
chip_gen: v6e
topology: v6e:2x2x1
jax: 0.10.0
libtpu: 0.0.40
codegen_flags: <defaults>
</compile_context>

<pallas_src>
import functools
import math

import jax
import jax.numpy as jnp
from jax.experimental import pallas as pl
from jax.experimental.pallas import tpu as pltpu


def _round_up(x, m):
    return (x + m - 1) // m * m


# =============================================================================
# Pass 1: fused projection GEMM, lane-dense packed outputs
# =============================================================================
def _proj_kernel(x_ref, w_ref, b_ref, dst_ref, src_ref, *, dw):
    # One wide GEMM instead of 4 skinny ones (K = Din badly underfills the MXU).
    y = jnp.dot(x_ref[...], w_ref[...],
                preferred_element_type=jnp.float32) + b_ref[...]
    dst_ref[...] = y[:, :dw]          # [dst_mut | src_lin | zero pad]
    src_ref[...] = y[:, dw:]          # [src_mut | src_self]


def _project(x_pad, w_big, b_big, *, dw, row_tile):
    n_pad, d_in = x_pad.shape
    wp = w_big.shape[1]
    sw = wp - dw
    kernel = functools.partial(_proj_kernel, dw=dw)
    return pl.pallas_call(
        kernel,
        out_shape=(
            jax.ShapeDtypeStruct((n_pad, dw), jnp.float32),   # dst_pack
            jax.ShapeDtypeStruct((n_pad, sw), jnp.float32),   # src_pack
        ),
        grid=(n_pad // row_tile,),
        in_specs=[
            pl.BlockSpec((row_tile, d_in), lambda i: (i, 0)),
            pl.BlockSpec((d_in, wp), lambda i: (0, 0)),
            pl.BlockSpec((1, wp), lambda i: (0, 0)),
        ],
        out_specs=(
            pl.BlockSpec((row_tile, dw), lambda i: (i, 0)),
            pl.BlockSpec((row_tile, sw), lambda i: (i, 0)),
        ),
        compiler_params=pltpu.CompilerParams(
            dimension_semantics=("parallel",)),
    )(x_pad, w_big, b_big)


# =============================================================================
# Pass 2: tiled GATv2 attention with online edge_softmax + tile-skipping
# =============================================================================
def _attn_kernel(cnt_ref, tidx_ref,                 # scalar-prefetch (SMEM)
                 dst_ref, srcT_ref, adj_ref, attn_ref,
                 out_ref,
                 m_scr, l_scr, acc_scr,
                 *, num_heads, out_feats, negative_slope):
    H, F = num_heads, out_feats
    HF = H * F
    d = pl.program_id(0)              # dst tile     (parallel -> megacore)
    j = pl.program_id(1)              # src-tile slot (arbitrary, reduction)
    neg_big = jnp.float32(-1e30)

    # ---- init running softmax stats on the first src step --------------------
    @pl.when(j == 0)
    def _init():
        m_scr[...] = jnp.full_like(m_scr, neg_big)
        l_scr[...] = jnp.zeros_like(l_scr)
        acc_scr[...] = jnp.zeros_like(acc_scr)

    # ---- compute only for real (nonzero) adjacency tiles ----------------------
    @pl.when(j < cnt_ref[d])
    def _compute():
        mask = adj_ref[...] > 0                               # (td, ts)

        # H, F are small and static; each (h, f) step only touches single
        # lane-dense (td, ts) slabs, so live ranges stay bounded.
        for h in range(H):
            sc = jnp.zeros(mask.shape, jnp.float32)
            for f in range(F):
                c = h * F + f
                a = attn_ref[h:h + 1, f:f + 1]                # (1, 1)
                dcol = dst_ref[:, c:c + 1]                    # (td, 1) lane-bcast
                srow = srcT_ref[c:c + 1, :]                   # (1, ts) sublane-bcast
                pair = dcol + srow                            # (td, ts) lane-dense
                # a * leaky_relu(pair) == where(pair>=0, a, a*slope) * pair
                coef = jnp.where(pair >= 0, a, a * negative_slope)
                sc = sc + coef * pair
            sc = jnp.where(mask, sc, neg_big)

            # online (flash-style) edge_softmax over the src axis
            m_prev = m_scr[:, h:h + 1]                        # (td, 1)
            m_new = jnp.maximum(m_prev, jnp.max(sc, axis=-1, keepdims=True))
            p = jnp.where(mask, jnp.exp(sc - m_new), 0.0)     # (td, ts)
            corr = jnp.exp(m_prev - m_new)                    # (td, 1)
            l_scr[:, h:h + 1] = corr * l_scr[:, h:h + 1] + jnp.sum(
                p, axis=-1, keepdims=True)
            # aggregation: p @ src_self_h ; src_self arrives transposed in the
            # packed src stream -> standard flash-attention NT matmul (MXU).
            ss_t_h = srcT_ref[HF + h * F: HF + (h + 1) * F, :]    # (F, ts)
            ft = jax.lax.dot_general(
                p, ss_t_h, (((1,), (1,)), ((), ())),
                preferred_element_type=jnp.float32)               # (td, F)
            acc_scr[:, h * F:(h + 1) * F] = (
                corr * acc_scr[:, h * F:(h + 1) * F] + ft)
            m_scr[:, h:h + 1] = m_new

    # ---- finalize: normalize & assemble the lane-dense output block ----------
    @pl.when(j == pl.num_programs(1) - 1)
    def _finalize():
        ow = out_ref.shape[1]
        out_ref[:, 0:F] = dst_ref[:, HF:HF + F]               # slot 0 = fc_src_lin(x)
        # guard zero-in-degree / padded rows: emit 0 instead of NaN
        l_safe = jnp.maximum(l_scr[...], jnp.float32(1e-30))  # (td, H)
        for h in range(H):
            out_ref[:, F + h * F: F + (h + 1) * F] = (
                acc_scr[:, h * F:(h + 1) * F] / l_safe[:, h:h + 1])
        if (H + 1) * F < ow:
            out_ref[:, (H + 1) * F:] = jnp.zeros(
                (out_ref.shape[0], ow - (H + 1) * F), jnp.float32)


def gatv4_conv_pallas(x, params, adj, *, num_heads, out_feats,
                      negative_slope=0.2, dst_block=128, src_block=128):
    """GATv4Conv forward. adj[j, i] != 0  <=>  edge i -> j (dense binary mask).

    Tiling guidance: v5e dst_block=256/src_block=128; v6e dst_block=256,
    src_block=256-512; v7x dst_block=64-128, src_block=128 (keep n_pad/dst_block
    even so the parallel dst axis splits across both TensorCores).
    NOTE: the adjacency must be a concrete array (the wrapper builds a static
    CSR-of-tiles DMA schedule from it), so do not jit this wrapper over adj.
    """
    (w_sm, b_sm, w_dm, b_dm, w_ss, b_ss, w_sl, b_sl, attn) = params
    N, d_in = x.shape
    H, F = num_heads, out_feats
    HF = H * F
    assert (2 * HF) % 8 == 0

    dw = max(128, _round_up(HF + F, 128))        # dst-pack width (lane dense)
    sw = 2 * HF                                  # src-pack width [src_mut|src_self]
    ow = max(128, _round_up((H + 1) * F, 128))   # lane-dense output width

    # ---- tiling plan (respects the (8, 128) block-shape constraints) --------
    assert dst_block % 8 == 0
    n8 = _round_up(N, 8)
    td = dst_block if n8 > dst_block else n8
    if n8 <= src_block:                      # single src tile: full lane extent
        n_pad = _round_up(N, td)
        ts = n_pad
    else:
        assert src_block % 128 == 0, "src_block must be a multiple of 128"
        ts = src_block
        n_pad = _round_up(N, math.lcm(td, ts))
    n_d, n_s = n_pad // td, n_pad // ts

    x_pad = jnp.pad(x, ((0, n_pad - N), (0, 0)))
    adj_pad = jnp.pad(adj, ((0, n_pad - N), (0, n_pad - N)))
    adj_i8 = (adj_pad > 0).astype(jnp.int8)            # 4x fewer adj HBM bytes

    # ---- CSR-of-tiles schedule (scalar-prefetched; drives src/adj index_maps)
    tile_nnz = adj_i8.reshape(n_d, td, n_s, ts).sum(axis=(1, 3),
                                                    dtype=jnp.int32)  # (n_d, n_s)
    nz = tile_nnz > 0
    cnt = jnp.sum(nz, axis=1, dtype=jnp.int32)                        # (n_d,)
    max_j = max(int(jnp.max(cnt)), 1)        # static grid extent (concrete adj)
    s_ids = jnp.arange(n_s, dtype=jnp.int32)
    order = jnp.argsort(jnp.where(nz, s_ids[None, :], n_s), axis=1)[:, :max_j]
    # ragged tail repeats the last valid tile index -> tail DMAs become no-ops
    pos = jnp.arange(max_j, dtype=jnp.int32)[None, :]
    last = jnp.maximum(cnt - 1, 0)[:, None]
    tidx = jnp.take_along_axis(order, jnp.minimum(pos, last), axis=1)
    tidx = tidx.astype(jnp.int32).reshape(-1)          # flat 1-D for SMEM

    # ---- pass 1: fused projection GEMM, packed lane-dense outputs ------------
    wp = dw + sw
    w_big = jnp.zeros((d_in, wp), jnp.float32)
    w_big = w_big.at[:, 0:HF].set(w_dm)
    w_big = w_big.at[:, HF:HF + F].set(w_sl)
    w_big = w_big.at[:, dw:dw + HF].set(w_sm)
    w_big = w_big.at[:, dw + HF:dw + 2 * HF].set(w_ss)
    b_big = jnp.zeros((1, wp), jnp.float32)
    b_big = b_big.at[:, 0:HF].set(b_dm)
    b_big = b_big.at[:, HF:HF + F].set(b_sl)
    b_big = b_big.at[:, dw:dw + HF].set(b_sm)
    b_big = b_big.at[:, dw + HF:dw + 2 * HF].set(b_ss)

    row_tile = td                      # pass 1 is pure streaming: bigger tiles
    for cand in (1024, 512, 256):      # amortize the ~0.35us per-step overhead
        if n_pad % cand == 0:
            row_tile = cand
            break
    dst_pack, src_pack = _project(x_pad, w_big, b_big, dw=dw, row_tile=row_tile)
    srcT = jnp.transpose(src_pack)     # (2*HF, n_pad): rows = [src_mut^T; src_self^T]

    # ---- pass 2: tiled attention with online edge_softmax --------------------
    kernel = functools.partial(_attn_kernel, num_heads=H, out_feats=F,
                               negative_slope=negative_slope)
    n_edge_tiles = n_d * max_j
    flops = n_edge_tiles * H * td * ts * (7 * F + 10)      # scores + aggregation
    transcendentals = n_edge_tiles * 2 * H * td * ts       # exp
    bytes_accessed = (n_d * td * dw * 4                    # dst stream
                      + n_edge_tiles * (sw * ts * 4 + td * ts)   # src + adj tiles
                      + n_pad * ow * 4)                    # output

    grid_spec = pltpu.PrefetchScalarGridSpec(
        num_scalar_prefetch=2,
        grid=(n_d, max_j),
        in_specs=[
            pl.BlockSpec((td, dw), lambda d, j, c, t: (d, 0)),          # dst pack
            pl.BlockSpec((sw, ts),
                         lambda d, j, c, t: (0, t[d * max_j + j])),     # srcT pack
            pl.BlockSpec((td, ts),
                         lambda d, j, c, t: (d, t[d * max_j + j])),     # adjacency
            pl.BlockSpec((H, F), lambda d, j, c, t: (0, 0)),            # attn
        ],
        out_specs=pl.BlockSpec((td, ow), lambda d, j, c, t: (d, 0)),
        scratch_shapes=[
            pltpu.VMEM((td, H), jnp.float32),    # running max  m
            pltpu.VMEM((td, H), jnp.float32),    # running sum  l
            pltpu.VMEM((td, HF), jnp.float32),   # running weighted acc
        ],
    )
    out_pad = pl.pallas_call(
        kernel,
        out_shape=jax.ShapeDtypeStruct((n_pad, ow), jnp.float32),
        grid_spec=grid_spec,
        compiler_params=pltpu.CompilerParams(
            dimension_semantics=("parallel", "arbitrary")),
        cost_estimate=pl.CostEstimate(flops=int(flops),
                                      transcendentals=int(transcendentals),
                                      bytes_accessed=int(bytes_accessed)),
    )(cnt, tidx, dst_pack, srcT, adj_i8, attn)

    return out_pad[:N, :(H + 1) * F].reshape(N, H + 1, F)


# ----------------------------- pure-JAX reference -----------------------------
def gatv4_conv_ref(x, params, adj, *, num_heads, out_feats, negative_slope=0.2):
    (w_sm, b_sm, w_dm, b_dm, w_ss, b_ss, w_sl, b_sl, attn) = params
    H, F = num_heads, out_feats
    N = x.shape[0]
    src_mut = (x @ w_sm + b_sm).reshape(N, H, F)
    dst_mut = (x @ w_dm + b_dm).reshape(N, H, F)
    src_self = (x @ w_ss + b_ss).reshape(N, H, F)
    src_lin = (x @ w_sl + b_sl)[:, None, :]
    pair = dst_mut[:, None, :, :] + src_mut[None, :, :, :]       # (Nd, Ns, H, F)
    z = jnp.where(pair >= 0, pair, negative_slope * pair)
    scores = jnp.einsum('jihf,hf->jih', z, attn)                 # (Nd, Ns, H)
    mask = adj[:, :, None] > 0
    scores = jnp.where(mask, scores, -1e30)
    scores = scores - scores.max(axis=1, keepdims=True)
    p = jnp.exp(scores) * adj[:, :, None]
    alpha = p / p.sum(axis=1, keepdims=True)
    ft = jnp.einsum('jih,ihf->jhf', alpha, src_self)
    return jnp.concatenate([src_lin, ft], axis=1)


# --------------------------- deterministic param init -------------------------
def _xavier_normal(key, in_dim, out_dim, gain):
    std = gain * math.sqrt(2.0 / (in_dim + out_dim))
    # stored as (in, out) so the kernel does x @ W
    return std * jax.random.normal(key, (in_dim, out_dim), dtype=jnp.float32)


def init_params(key, in_feats, out_feats, num_heads):
    gain = math.sqrt(2.0)  # nn.init.calculate_gain('relu')
    k = jax.random.split(key, 5)
    HF = out_feats * num_heads
    w_src_mut = _xavier_normal(k[0], in_feats, HF, gain)
    w_dst_mut = _xavier_normal(k[1], in_feats, HF, gain)
    w_src_self = _xavier_normal(k[2], in_feats, HF, gain)
    w_src_lin = _xavier_normal(k[3], in_feats, out_feats, gain)
    b_src_mut = jnp.zeros((1, HF), jnp.float32)
    b_dst_mut = jnp.zeros((1, HF), jnp.float32)
    b_src_self = jnp.zeros((1, HF), jnp.float32)
    b_src_lin = jnp.zeros((1, out_feats), jnp.float32)
    # attn parameter: torch shape (1, H, F); xavier_normal fan_in=H*F, fan_out=F
    std_attn = gain * math.sqrt(2.0 / (num_heads * out_feats + out_feats))
    attn = std_attn * jax.random.normal(k[4], (num_heads, out_feats),
                                        dtype=jnp.float32)
    return (w_src_mut, b_src_mut, w_dst_mut, b_dst_mut,
            w_src_self, b_src_self, w_src_lin, b_src_lin, attn)


def ring_adjacency(n):
    # adj[j, i] = 1 if edge i -> j ; ring graph + self loops
    j = jnp.arange(n)[:, None]
    i = jnp.arange(n)[None, :]
    return ((i == j) | (i == (j - 1) % n) | (i == (j + 1) % n)).astype(jnp.float32)


def path_adjacency(n):
    # banded path graph + self loops (no wrap-around => some all-zero tiles)
    j = jnp.arange(n)[:, None]
    i = jnp.arange(n)[None, :]
    return (jnp.abs(i - j) <= 1).astype(jnp.float32)


if __name__ == "__main__":
    IN_FEATS, OUT_FEATS, HEADS = 16, 16, 4
    key = jax.random.PRNGKey(0)
    k_x1, k_x2, k_p = jax.random.split(key, 3)
    params = init_params(k_p, IN_FEATS, OUT_FEATS, HEADS)

    # -- test 1: tiny graph (single tile; same shapes as the original spec) --
    N1 = 8
    x1 = jax.random.normal(k_x1, (N1, IN_FEATS), dtype=jnp.float32)
    adj1 = ring_adjacency(N1)
    out1 = jax.block_until_ready(
        gatv4_conv_pallas(x1, params, adj1, num_heads=HEADS, out_feats=OUT_FEATS))
    ref1 = gatv4_conv_ref(x1, params, adj1, num_heads=HEADS, out_feats=OUT_FEATS)
    assert out1.shape == (N1, HEADS + 1, OUT_FEATS), out1.shape
    assert jnp.allclose(out1, ref1, rtol=2e-2, atol=2e-3), float(
        jnp.max(jnp.abs(out1 - ref1)))

    # -- test 2: multi-tile grid (online edge_softmax across src tiles, empty
    #            adjacency tiles skipped via the CSR-of-tiles DMA schedule) ---
    N2 = 256
    x2 = jax.random.normal(k_x2, (N2, IN_FEATS), dtype=jnp.float32)
    adj2 = path_adjacency(N2)
    out2 = jax.block_until_ready(
        gatv4_conv_pallas(x2, params, adj2, num_heads=HEADS, out_feats=OUT_FEATS,
                          dst_block=64, src_block=128))
    ref2 = gatv4_conv_ref(x2, params, adj2, num_heads=HEADS, out_feats=OUT_FEATS)
    assert out2.shape == (N2, HEADS + 1, OUT_FEATS), out2.shape
    assert jnp.allclose(out2, ref2, rtol=2e-2, atol=2e-3), float(
        jnp.max(jnp.abs(out2 - ref2)))

    print("KERNEL_OK")
</pallas_src>

<mosaic_0001>
module attributes {stable_mosaic.version = 11 : i64} {
  func.func @_proj_kernel(%arg0: i32, %arg1: memref<8x16xf32, #tpu.memory_space<vmem>>, %arg2: memref<16x256xf32, #tpu.memory_space<vmem>>, %arg3: memref<1x256xf32, #tpu.memory_space<vmem>>, %arg4: memref<8x128xf32, #tpu.memory_space<vmem>>, %arg5: memref<8x128xf32, #tpu.memory_space<vmem>>) attributes {dimension_semantics = [#tpu.dimension_semantics<parallel>], iteration_bounds = array<i64: 1>, scalar_prefetch = 0 : i64, scratch_operands = 0 : i64, tpu.core_type = #tpu.core_type<tc>, window_params = [{transform_indices = @transform_0, window_bounds = array<i64: 8, 16>}, {pipeline_mode = #tpu.pipeline_mode<synchronous>, transform_indices = @transform_1, window_bounds = array<i64: 16, 256>}, {pipeline_mode = #tpu.pipeline_mode<synchronous>, transform_indices = @transform_2, window_bounds = array<i64: 1, 256>}, {transform_indices = @transform_3, window_bounds = array<i64: 8, 128>}, {transform_indices = @transform_4, window_bounds = array<i64: 8, 128>}]} {
    %c0 = arith.constant 0 : index
    %c0_0 = arith.constant 0 : index
    %0 = vector.load %arg1[%c0, %c0_0] : memref<8x16xf32, #tpu.memory_space<vmem>>, vector<8x16xf32>
    %c0_1 = arith.constant 0 : index
    %c0_2 = arith.constant 0 : index
    %1 = vector.load %arg2[%c0_1, %c0_2] : memref<16x256xf32, #tpu.memory_space<vmem>>, vector<16x256xf32>
    %cst = arith.constant dense<0.000000e+00> : vector<8x256xf32>
    %2 = tpu.matmul %0, %1, %cst {dimension_numbers = #tpu.dot_dimension_numbers<[1], [0], [0], [1], [0, 0, 1, 1], [], []>} : vector<8x16xf32>, vector<16x256xf32>, vector<8x256xf32> -> vector<8x256xf32>
    %c0_3 = arith.constant 0 : index
    %c0_4 = arith.constant 0 : index
    %3 = vector.load %arg3[%c0_3, %c0_4] : memref<1x256xf32, #tpu.memory_space<vmem>>, vector<1x256xf32>
    %4 = vector.broadcast %3 : vector<1x256xf32> to vector<8x256xf32>
    %5 = arith.addf %2, %4 : vector<8x256xf32>
    %6 = vector.extract_strided_slice %5 {offsets = [0, 0], sizes = [8, 128], strides = [1, 1]} : vector<8x256xf32> to vector<8x128xf32>
    %c0_5 = arith.constant 0 : index
    %c0_6 = arith.constant 0 : index
    %7 = vector.load %arg4[%c0_5, %c0_6] : memref<8x128xf32, #tpu.memory_space<vmem>>, vector<8x128xf32>
    tpu.vector_store %arg4[%c0_5, %c0_6], %6 {strides = array<i32>} : memref<8x128xf32, #tpu.memory_space<vmem>>, vector<8x128xf32>,
    %8 = vector.extract_strided_slice %5 {offsets = [0, 128], sizes = [8, 128], strides = [1, 1]} : vector<8x256xf32> to vector<8x128xf32>
    %c0_7 = arith.constant 0 : index
    %c0_8 = arith.constant 0 : index
    %9 = vector.load %arg5[%c0_7, %c0_8] : memref<8x128xf32, #tpu.memory_space<vmem>>, vector<8x128xf32>
    tpu.vector_store %arg5[%c0_7, %c0_8], %8 {strides = array<i32>} : memref<8x128xf32, #tpu.memory_space<vmem>>, vector<8x128xf32>,
    return
  }
  func.func @transform_0(%arg0: i32) -> (i32, i32) {
    %c0_i32 = arith.constant 0 : i32
    %c0_i32_0 = arith.constant 0 : i32
    return %arg0, %c0_i32 : i32, i32
  }
  func.func @transform_1(%arg0: i32) -> (i32, i32) {
    %c0_i32 = arith.constant 0 : i32
    %c0_i32_0 = arith.constant 0 : i32
    %c0_i32_1 = arith.constant 0 : i32
    return %c0_i32, %c0_i32_0 : i32, i32
  }
  func.func @transform_2(%arg0: i32) -> (i32, i32) {
    %c0_i32 = arith.constant 0 : i32
    %c0_i32_0 = arith.constant 0 : i32
    %c0_i32_1 = arith.constant 0 : i32
    return %c0_i32, %c0_i32_0 : i32, i32
  }
  func.func @transform_3(%arg0: i32) -> (i32, i32) {
    %c0_i32 = arith.constant 0 : i32
    %c0_i32_0 = arith.constant 0 : i32
    return %arg0, %c0_i32 : i32, i32
  }
  func.func @transform_4(%arg0: i32) -> (i32, i32) {
    %c0_i32 = arith.constant 0 : i32
    %c0_i32_0 = arith.constant 0 : i32
    return %arg0, %c0_i32 : i32, i32
  }
}

</mosaic_0001>

<bundles_post_ra>
// kernel: tpu_custom_call.1
= control target key start
LH: loop header
LB: loop body
LE: loop exit
PB: predicated region body
PF: predicated region fallthrough
CT: control target
= control target key end

     0   :  { %10 = vsyncpa [#allocation3], 0  ;;  %s311_s0 = inlined_call_operand.hbm [shape: f32[8,16], index: 0, kind: input, shape index: {}]   ;;  %s312_s1 = inlined_call_operand.hbm [shape: f32[16,256], index: 1, kind: input, shape index: {}]   ;;  %s313_s2 = inlined_call_operand.vmem [shape: f32[1,256], index: 2, kind: input, shape index: {}]   ;;  %s314_s3 = inlined_call_operand.hbm [shape: f32[8,128], index: 3, kind: output, shape index: {0}]   ;;  %s315_s4 = inlined_call_operand.hbm [shape: f32[8,128], index: 4, kind: output, shape index: {1}]  }
   0x1   :  { %11 = vsyncpa [#allocation6], 0 }
   0x2   :  { %12 = vsyncpa [#allocation4], 0 }
   0x3   :  { %13 = vsyncpa [#allocation9], 0  ;;  %s264_s15 = smov [#allocation2]   ;;  %s265_s17 = smov [#allocation5]  }
   0x4   :  { %s20_s16 = sshll.u32 %s264_s15, 4  ;;  %s29_s18 = sshll.u32 %s265_s17, 4  ;;  %s21_s16 = int_to_ptr.vmem [resolvable:$true] %s20_s16  ;;  %s30_s18 = int_to_ptr.vmem [resolvable:$true] %s29_s18 }
   0x5   :  { %s184_s19 = scalar_lea.vmem %s21_s16, 128  ;;  %p189_p1 = scmp.lt.s32.totalorder %s21_s16, %s21_s16 }
   0x6   :  { %p185_p0 = scmp.ne.s32.totalorder %s21_s16, %s184_s19  ;;  %p190_p2 = scmp.lt.s32.totalorder %s184_s19, %s184_s19 }
   0x8   :  { %p191_p3 = por %p190_p2, %p189_p1 }
   0xa   :  { %p192_p4 = pnand %p191_p3, %p185_p0 }
   0xc   :  { %195 = shalt.err (!%p192_p4)
}
   0xd   :  { %23 = dma.hbm_to_vmem [thread:$0]  %s311_s0, 128, %s21_s16, [#allocation3]  }
   0xe   :  { %s204_s22 = scalar_lea.vmem %s30_s18, 512  ;;  %p209_p6 = scmp.lt.s32.totalorder %s30_s18, %s30_s18 }
   0xf   :  { %p205_p5 = scmp.ne.s32.totalorder %s30_s18, %s204_s22  ;;  %p210_p7 = scmp.lt.s32.totalorder %s204_s22, %s204_s22 }
  0x11   :  { %p211_p8 = por %p210_p7, %p209_p6 }
  0x13   :  { %p212_p9 = pnand %p211_p8, %p205_p5 }
  0x15   :  { %215 = shalt.err (!%p212_p9)
}
  0x16   :  { %s266_s23 = smov 256   ;;  %s267_s24 = smov 16  }
  0x17   :  { %35 = dma.hbm_to_vmem [thread:$0]  %s312_s1, 512, %s30_s18, [#allocation6], %s266_s23, %s266_s23, %s267_s24  }
  0x18   :  { %256 = dma.done.wait [#allocation3], 128  }
  0x19   :  { %257 = vsyncadd [#allocation3], 4294967168 }
  0x1a   :  { %258 = dma.done.wait [#allocation6], 512  }
  0x1b   :  { %259 = vsyncadd [#allocation6], 4294966784  ;;  %v268_v0 = vmov 0.0   ;;  %v48_v1 = vld [vmem:[#allocation5 + $0x18] sm:$0xff]  ;;  %v47_v2 = vld [vmem:[#allocation5 + $0x10] sm:$0xff]  ;;  %vm61_vm0 = vcmask 130048   ;;  %v51_v6 = vlaneseq }
  0x1c   :  { %129 = vmatprep.mubr.f32.mxu0 %v268_v0  ;;  %v46_v3 = vld [vmem:[#allocation5 + $0x8] sm:$0xff]  ;;  %93 = vmatprep.subr.mxu0 %v48_v1  ;;  %v45_v4 = vld [vmem:[#allocation5] sm:$0xff]  ;;  %v44_v5 = vld [vmem:[#allocation2] sm:$0xff]  ;;  %s269_s27 = smov [#allocation7]   ;;  %s270_s29 = smov [#allocation8]  }
  0x1d   :  { %94 = vmatpush1.msra.mxu0 %v47_v2  ;;  %v52_v7 = vshrl.u32 %v51_v6, 7  ;;  %v49_v9 = vld [vmem:[%s313_s2] sm:$0x3]  ;;  %s144_s28 = sshll.u32 %s269_s27, 4  ;;  %s154_s30 = sshll.u32 %s270_s29, 4  ;;  %s145_s28 = int_to_ptr.vmem [resolvable:$true] %s144_s28  ;;  %s155_s30 = int_to_ptr.vmem [resolvable:$true] %s154_s30 }
  0x1e   :  { %95 = vmatprep.subr.mxu0 %v46_v3  ;;  %s216_s5 = scalar_lea.vmem %s145_s28, 128  ;;  %p221_p11 = scmp.lt.s32.totalorder %s145_s28, %s145_s28 }
  0x1f   :  { %96 = vmatpush1.msra.mxu0 %v45_v4  ;;  %v53_v8 = vsub.s32 0, %v52_v7  ;;  %v57_v10 = vsub.s32 1, %v52_v7  ;;  %p217_p10 = scmp.ne.s32.totalorder %s145_s28, %s216_s5  ;;  %p222_p12 = scmp.lt.s32.totalorder %s216_s5, %s216_s5 }
  0x20   :  { %168 = vmatmul.mubr.msk.f32.vlgmr.msra.gmra.mxu0 %vm61_vm0, %v44_v5 }
  0x21   :  { %v54_v11 = vrot.slane %v49_v9, %v53_v8  ;;  %v58_v12 = vrot.slane %v49_v9, %v57_v10  ;;  %p223_p13 = por %p222_p12, %p221_p11 }
  0x23   :  { %p224_p0 = pnand %p223_p13, %p217_p10 }
  0xe0   :  { %v131_v13 = vpop.f32.mrf.mxu0 }
  0xe1   :  { %v132_v14 = vadd.f32 %v131_v13, %v54_v11 }
  0xe2   :  { %v133_v15 = vpop.f32.mrf.mxu0 }
  0xe3   :  { %136 = vst [vmem:[#allocation7] sm:$0xff] %v132_v14  ;;  %v134_v16 = vadd.f32 %v133_v15, %v58_v12 }
  0xe4   :  { %227 = shalt.err (!%p224_p0)
}
  0xe5   :  { %147 = dma.vmem_to_hbm [thread:$0]  %s145_s28, 128, %s314_s3, [#allocation4]   ;;  %137 = vst [vmem:[#allocation8] sm:$0xff] %v134_v16 }
  0xe6   :  { %s236_s7 = scalar_lea.vmem %s155_s30, 128  ;;  %p241_p2 = scmp.lt.s32.totalorder %s155_s30, %s155_s30 }
  0xe7   :  { %p237_p1 = scmp.ne.s32.totalorder %s155_s30, %s236_s7  ;;  %p242_p3 = scmp.lt.s32.totalorder %s236_s7, %s236_s7 }
  0xe9   :  { %p243_p4 = por %p242_p3, %p241_p2 }
  0xeb   :  { %p244_p5 = pnand %p243_p4, %p237_p1 }
  0xed   :  { %247 = shalt.err (!%p244_p5)
}
  0xee   :  { %157 = dma.vmem_to_hbm [thread:$0]  %s155_s30, 128, %s315_s4, [#allocation9]  }
  0xef   :  { %260 = dma.done.wait [#allocation4], 128  }
  0xf0   :  { %261 = vsyncadd [#allocation4], 4294967168 }
  0xf1   :  { %262 = dma.done.wait [#allocation9], 128  }
  0xf2   :  { %263 = vsyncadd [#allocation9], 4294967168 }
  0xf3   :  { %164 = vsyncpa [#allocation3], 1 }
  0xf4   :  { %165 = vsyncpa [#allocation6], 1 }
  0xf5   :  { %166 = vsyncpa [#allocation4], 1 }
  0xf6   :  { %167 = vsyncpa [#allocation9], 1 }

</bundles_post_ra>
